<compile_context>
chip_gen: v7x
topology: tpu7x:2x2x1
jax: 0.10.0
libtpu: 0.0.40
codegen_flags: <defaults>
</compile_context>

<pallas_src>
import functools
import inspect

import jax
import jax.numpy as jnp
from jax.experimental import pallas as pl
from jax.experimental.pallas import tpu as pltpu


# ----------------------------------------------------------------------------
# Fused Pallas kernel: conv3x3 -> (+bias +time-proj) -> SiLU -> conv3x3
# ----------------------------------------------------------------------------

def _conv3x3_taps(src, w_ref, keep0, keep2, *, W, HW):
    # src   : (C, FW) f32 -- flattened feature map, zero-padded with one row
    #         top/bottom plus one element front/back, so each 3x3 tap is a
    #         constant lane-offset slice of length H*W.
    # w_ref : (3, Cout, 3*C) -- per-kh weights, kw taps merged into K.
    # keep0/keep2: (1, HW) bool lane masks for the wrapped edge columns of the
    #         kw=0 / kw=2 taps.
    cout = w_ref.shape[1]
    acc = jnp.zeros((cout, HW), jnp.float32)
    for kh in range(3):
        base = kh * W
        p0 = jnp.where(keep0, src[:, base + 0: base + 0 + HW], 0.0)
        p1 = src[:, base + 1: base + 1 + HW]
        p2 = jnp.where(keep2, src[:, base + 2: base + 2 + HW], 0.0)
        patch = jnp.concatenate([p0, p1, p2], axis=0)            # (3*C, HW)
        acc = acc + jnp.dot(w_ref[kh], patch,
                            preferred_element_type=jnp.float32)  # MXU
    return acc


def _fused_unet_block_kernel(x_ref, w1_ref, b1_ref, w2_ref, b2_ref,
                             o_ref, xbuf, hbuf, *, H, W):
    # x_ref : (1, Cin, H*W)        channel-major input (one batch item)
    # w1_ref: (3, Cmid, 3*Cin)     conv1 weights, taps merged into K
    # b1_ref: (1, Cmid, 1)         conv1 bias + hoisted time projection
    # w2_ref: (3, Cmid, 3*Cmid)    conv2 weights
    # b2_ref: (Cmid, 1)            conv2 bias
    # o_ref : (1, Cmid, H*W)       lane-dense output
    # xbuf  : (Cin, FW)  VMEM scratch -- padded flat copy of the input
    # hbuf  : (Cmid, FW) VMEM scratch -- padded flat intermediate activation
    HW = H * W
    lane = jax.lax.broadcasted_iota(jnp.int32, (1, HW), 1)
    keep0 = (lane % W) != 0            # kw=0 tap: left edge wraps -> mask
    keep2 = (lane % W) != (W - 1)      # kw=2 tap: right edge wraps -> mask

    # In-kernel halo: build the zero-padded flat layout in VMEM (no padded
    # copy of the activation ever touches HBM).
    xbuf[...] = jnp.zeros_like(xbuf)
    xbuf[:, W + 1: W + 1 + HW] = x_ref[0].astype(xbuf.dtype)

    # conv1 + (bias + time projection) epilogue
    h = _conv3x3_taps(xbuf[...], w1_ref, keep0, keep2, W=W, HW=HW) + b1_ref[0]

    # SiLU, numerically stable (exp argument is always <= 0; exp on the EUP)
    z = jnp.exp(-jnp.abs(h))
    h = h * jnp.where(h >= 0.0, 1.0, z) / (1.0 + z)

    # repack the intermediate into the padded flat layout (stays in VMEM)
    hbuf[...] = jnp.zeros_like(hbuf)
    hbuf[:, W + 1: W + 1 + HW] = h.astype(hbuf.dtype)

    # conv2 + bias, lane-dense store
    y = _conv3x3_taps(hbuf[...], w2_ref, keep0, keep2, W=W, HW=HW) + b2_ref[...]
    o_ref[0] = y.astype(o_ref.dtype)


@jax.jit
def fused_unet_block_apply(x, t, w1, b1, wt, bt, w2, b2):
    """x: NCHW (B, Cin, H, W); t: (B, Tdim); w*: HWIO conv weights."""
    B, Cin, H, W = x.shape
    Cmid = w1.shape[-1]
    Cout = w2.shape[-1]
    HW = H * W
    FW = (H + 2) * W + 2   # flat length: 1 pad row top/bottom + 1 elem each end

    # Channel-major flattening (free reshape; NCHW is already channel-major).
    x_flat = x.reshape(B, Cin, HW)

    # Taps merged into the contraction dim:
    #   w1r[kh][co, kw*Cin + ci] = w1[kh, kw, ci, co]
    w1r = jnp.transpose(w1.reshape(3, 3 * Cin, Cmid), (0, 2, 1))
    w2r = jnp.transpose(w2.reshape(3, 3 * Cmid, Cout), (0, 2, 1))

    # Hoisted time projection folded into conv1's bias (per-channel column).
    bias1 = (t @ wt + bt + b1)[:, :, None]          # (B, Cmid, 1)
    bias2 = b2[:, None]                             # (Cout, 1)

    flops = 2 * B * HW * 9 * (Cin * Cmid + Cmid * Cout)
    bytes_accessed = 4 * (x_flat.size + w1r.size + w2r.size
                          + bias1.size + bias2.size + B * Cout * HW)

    out = pl.pallas_call(
        functools.partial(_fused_unet_block_kernel, H=H, W=W),
        out_shape=jax.ShapeDtypeStruct((B, Cout, HW), x.dtype),
        grid=(B,),
        in_specs=[
            pl.BlockSpec((1, Cin, HW), lambda b: (b, 0, 0)),
            pl.BlockSpec((3, Cmid, 3 * Cin), lambda b: (0, 0, 0)),
            pl.BlockSpec((1, Cmid, 1), lambda b: (b, 0, 0)),
            pl.BlockSpec((3, Cout, 3 * Cmid), lambda b: (0, 0, 0)),
            pl.BlockSpec((Cout, 1), lambda b: (0, 0)),
        ],
        out_specs=pl.BlockSpec((1, Cout, HW), lambda b: (b, 0, 0)),
        scratch_shapes=[
            pltpu.VMEM((Cin, FW), jnp.float32),
            pltpu.VMEM((Cmid, FW), jnp.float32),
        ],
        compiler_params=pltpu.CompilerParams(
            # B >= 2 parallel axis lets v7x shard across both TensorCores;
            # cost on v5e/v6e is just ~0.35 us/step of pipeline overhead.
            dimension_semantics=("parallel",)),
        cost_estimate=pl.CostEstimate(
            flops=flops,
            transcendentals=B * Cmid * HW,
            bytes_accessed=bytes_accessed),
    )(x_flat, w1r, bias1, w2r, bias2)

    return out.reshape(B, Cout, H, W)


# ----------------------------------------------------------------------------
# Wrappee modules (mirror the torch sub-modules; forward signatures drive the
# UNetBlock dispatch).  Their individual forwards are the plain-JAX fallback
# path; the canonical chain runs through the fused Pallas kernel above.
# ----------------------------------------------------------------------------
# TODO(synk): non-canonical wrappee chains fall back to these XLA forwards
# rather than dedicated per-op Pallas kernels.

class Conv2d3x3:
    def __init__(self, w, b):           # w: (3, 3, Cin, Cout) HWIO, b: (Cout,)
        self.w, self.b = w, b

    def forward(self, x):               # accepts x only (NCHW)
        dn = ('NCHW', 'HWIO', 'NCHW')
        y = jax.lax.conv_general_dilated(x, self.w, (1, 1), 'SAME',
                                         dimension_numbers=dn)
        return y + self.b[None, :, None, None]

    def __call__(self, *args):
        return self.forward(*args)


class AddTimeBias:
    def __init__(self, wt, bt):         # wt: (Tdim, C), bt: (C,)
        self.wt, self.bt = wt, bt

    def forward(self, x, t):            # accepts (x, t) -> conditioned module
        return x + (t @ self.wt + self.bt)[:, :, None, None]

    def __call__(self, *args):
        return self.forward(*args)


class SiLU:
    def forward(self, x):               # accepts x only
        return x * jax.nn.sigmoid(x)

    def __call__(self, *args):
        return self.forward(*args)


# ----------------------------------------------------------------------------
# UNetBlock: reproduction of the torch dispatch semantics + fused fast path
# ----------------------------------------------------------------------------

class UNetBlock:
    def __init__(self, wrappees):
        self.wrappees = list(wrappees)

    def forward(self, x, t, *, skips):
        # TODO(synk): base torch UNetBlock.forward raises NotImplementedError;
        # subclasses decide how `skips` is consumed.  This concrete block
        # ignores skips and runs the standard wrappee chain.
        return self._forward(x, t)

    def _forward(self, x, t):
        if self._is_canonical():
            c1, tb, _s, c2 = self.wrappees
            return fused_unet_block_apply(x, t, c1.w, c1.b, tb.wt, tb.bt,
                                          c2.w, c2.b)
        return self._forward_dispatch(x, t)

    def _is_canonical(self):
        w = self.wrappees
        return (len(w) == 4
                and isinstance(w[0], Conv2d3x3)
                and isinstance(w[1], AddTimeBias)
                and isinstance(w[2], SiLU)
                and isinstance(w[3], Conv2d3x3))

    def _forward_dispatch(self, x, t):
        # Exact reproduction of torch UNetBlock._forward signature dispatch.
        for f in self.wrappees:
            sig = inspect.signature(f.forward)
            try:
                sig.bind(x)
            except TypeError:
                args = (x, t)
            else:
                args = (x,)
            x = f(*args)
        return x

    def __call__(self, x, t, *, skips=()):
        return self.forward(x, t, skips=skips)


# ----------------------------------------------------------------------------
# Pure-JAX reference for correctness check (NCHW end-to-end)
# ----------------------------------------------------------------------------

def reference_forward(x, t, w1, b1, wt, bt, w2, b2):
    dn = ('NCHW', 'HWIO', 'NCHW')
    h = jax.lax.conv_general_dilated(x, w1, (1, 1), 'SAME',
                                     dimension_numbers=dn)
    h = h + b1[None, :, None, None]
    h = h + (t @ wt + bt)[:, :, None, None]
    h = h * jax.nn.sigmoid(h)
    h = jax.lax.conv_general_dilated(h, w2, (1, 1), 'SAME',
                                     dimension_numbers=dn)
    return h + b2[None, :, None, None]


if __name__ == "__main__":
    B, Cin, Cmid, H, W, Tdim = 2, 4, 8, 16, 16, 32

    key = jax.random.PRNGKey(0)
    ks = jax.random.split(key, 8)
    x = jax.random.normal(ks[0], (B, Cin, H, W), jnp.float32)   # NCHW input
    t = jax.random.normal(ks[1], (B, Tdim), jnp.float32)        # time embedding

    # Synthetic parameters with the shapes a torch UNetBlock would carry.
    w1 = jax.random.normal(ks[2], (3, 3, Cin, Cmid), jnp.float32) * 0.1
    b1 = jax.random.normal(ks[3], (Cmid,), jnp.float32) * 0.1
    wt = jax.random.normal(ks[4], (Tdim, Cmid), jnp.float32) * 0.1
    bt = jax.random.normal(ks[5], (Cmid,), jnp.float32) * 0.1
    w2 = jax.random.normal(ks[6], (3, 3, Cmid, Cmid), jnp.float32) * 0.1
    b2 = jax.random.normal(ks[7], (Cmid,), jnp.float32) * 0.1

    block = UNetBlock([
        Conv2d3x3(w1, b1),
        AddTimeBias(wt, bt),
        SiLU(),
        Conv2d3x3(w2, b2),
    ])

    out = jax.block_until_ready(block(x, t, skips=()))            # fused Pallas path
    ref = jax.block_until_ready(reference_forward(x, t, w1, b1, wt, bt, w2, b2))
    disp = jax.block_until_ready(block._forward_dispatch(x, t))   # dispatch semantics

    assert out.shape == (B, Cmid, H, W)
    assert jnp.allclose(out, ref, rtol=1e-4, atol=1e-4), "fused kernel mismatch vs reference"
    assert jnp.allclose(disp, ref, rtol=1e-4, atol=1e-4), "dispatch path mismatch vs reference"

    print("KERNEL_OK")
</pallas_src>

<mosaic_0001>
module attributes {stable_mosaic.version = 11 : i64} {
  func.func @_fused_unet_block_kernel(%arg0: i32, %arg1: memref<1x4x256xf32, #tpu.memory_space<vmem>>, %arg2: memref<3x8x12xf32, #tpu.memory_space<vmem>>, %arg3: memref<1x8x1xf32, #tpu.memory_space<vmem>>, %arg4: memref<3x8x24xf32, #tpu.memory_space<vmem>>, %arg5: memref<8x1xf32, #tpu.memory_space<vmem>>, %arg6: memref<1x8x256xf32, #tpu.memory_space<vmem>>, %arg7: memref<4x290xf32, #tpu.memory_space<vmem>>, %arg8: memref<8x290xf32, #tpu.memory_space<vmem>>) attributes {dimension_semantics = [#tpu.dimension_semantics<parallel>], iteration_bounds = array<i64: 2>, scalar_prefetch = 0 : i64, scratch_operands = 2 : i64, tpu.core_type = #tpu.core_type<tc>, window_params = [{transform_indices = @transform_0, window_bounds = array<i64: 1, 4, 256>}, {pipeline_mode = #tpu.pipeline_mode<synchronous>, transform_indices = @transform_1, window_bounds = array<i64: 3, 8, 12>}, {transform_indices = @transform_2, window_bounds = array<i64: 1, 8, 1>}, {pipeline_mode = #tpu.pipeline_mode<synchronous>, transform_indices = @transform_3, window_bounds = array<i64: 3, 8, 24>}, {pipeline_mode = #tpu.pipeline_mode<synchronous>, transform_indices = @transform_4, window_bounds = array<i64: 8, 1>}, {transform_indices = @transform_5, window_bounds = array<i64: 1, 8, 256>}]} {
    %0 = tpu.iota {dimensions = array<i32: 1>} : vector<1x256xi32>
    %c16_i32 = arith.constant 16 : i32
    %c0_i32 = arith.constant 0 : i32
    %1 = arith.cmpi eq, %c16_i32, %c0_i32 : i32
    %c1_i32 = arith.constant 1 : i32
    %2 = arith.select %1, %c1_i32, %c16_i32 : i32
    %3 = vector.broadcast %2 : i32 to vector<1x256xi32>
    %4 = arith.remsi %0, %3 : vector<1x256xi32>
    %c0_i32_0 = arith.constant 0 : i32
    %5 = vector.broadcast %c0_i32_0 : i32 to vector<1x256xi32>
    %6 = arith.cmpi ne, %4, %5 : vector<1x256xi32>
    %c0_i32_1 = arith.constant 0 : i32
    %7 = vector.broadcast %c0_i32_1 : i32 to vector<1x256xi32>
    %8 = arith.cmpi slt, %4, %7 : vector<1x256xi32>
    %c0_i32_2 = arith.constant 0 : i32
    %9 = arith.cmpi slt, %2, %c0_i32_2 : i32
    %10 = vector.broadcast %9 : i1 to vector<1x256xi1>
    %11 = vector.broadcast %10 : vector<1x256xi1> to vector<1x256xi1>
    %12 = arith.xori %8, %11 : vector<1x256xi1>
    %13 = arith.andi %12, %6 : vector<1x256xi1>
    %14 = vector.broadcast %2 : i32 to vector<1x256xi32>
    %15 = arith.addi %4, %14 : vector<1x256xi32>
    %16 = arith.select %13, %15, %4 : vector<1x256xi1>, vector<1x256xi32>
    %c0_i32_3 = arith.constant 0 : i32
    %17 = vector.broadcast %c0_i32_3 : i32 to vector<1x256xi32>
    %18 = arith.cmpi ne, %16, %17 : vector<1x256xi32>
    %c16_i32_4 = arith.constant 16 : i32
    %c0_i32_5 = arith.constant 0 : i32
    %19 = arith.cmpi eq, %c16_i32_4, %c0_i32_5 : i32
    %c1_i32_6 = arith.constant 1 : i32
    %20 = arith.select %19, %c1_i32_6, %c16_i32_4 : i32
    %21 = vector.broadcast %20 : i32 to vector<1x256xi32>
    %22 = arith.remsi %0, %21 : vector<1x256xi32>
    %c0_i32_7 = arith.constant 0 : i32
    %23 = vector.broadcast %c0_i32_7 : i32 to vector<1x256xi32>
    %24 = arith.cmpi ne, %22, %23 : vector<1x256xi32>
    %c0_i32_8 = arith.constant 0 : i32
    %25 = vector.broadcast %c0_i32_8 : i32 to vector<1x256xi32>
    %26 = arith.cmpi slt, %22, %25 : vector<1x256xi32>
    %c0_i32_9 = arith.constant 0 : i32
    %27 = arith.cmpi slt, %20, %c0_i32_9 : i32
    %28 = vector.broadcast %27 : i1 to vector<1x256xi1>
    %29 = vector.broadcast %28 : vector<1x256xi1> to vector<1x256xi1>
    %30 = arith.xori %26, %29 : vector<1x256xi1>
    %31 = arith.andi %30, %24 : vector<1x256xi1>
    %32 = vector.broadcast %20 : i32 to vector<1x256xi32>
    %33 = arith.addi %22, %32 : vector<1x256xi32>
    %34 = arith.select %31, %33, %22 : vector<1x256xi1>, vector<1x256xi32>
    %c15_i32 = arith.constant 15 : i32
    %35 = vector.broadcast %c15_i32 : i32 to vector<1x256xi32>
    %36 = arith.cmpi ne, %34, %35 : vector<1x256xi32>
    %cst = arith.constant 0.000000e+00 : f32
    %37 = vector.broadcast %cst : f32 to vector<4x290xf32>
    %c0 = arith.constant 0 : index
    %c0_10 = arith.constant 0 : index
    %38 = vector.load %arg7[%c0, %c0_10] : memref<4x290xf32, #tpu.memory_space<vmem>>, vector<4x290xf32>
    tpu.vector_store %arg7[%c0, %c0_10], %37 {strides = array<i32>} : memref<4x290xf32, #tpu.memory_space<vmem>>, vector<4x290xf32>,
    %c0_11 = arith.constant 0 : index
    %c0_12 = arith.constant 0 : index
    %c0_13 = arith.constant 0 : index
    %39 = vector.load %arg1[%c0_11, %c0_12, %c0_13] : memref<1x4x256xf32, #tpu.memory_space<vmem>>, vector<1x4x256xf32>
    %40 = vector.shape_cast %39 : vector<1x4x256xf32> to vector<4x256xf32>
    %c0_14 = arith.constant 0 : index
    %c17 = arith.constant 17 : index
    %41 = vector.load %arg7[%c0_14, %c17] : memref<4x290xf32, #tpu.memory_space<vmem>>, vector<4x256xf32>
    tpu.vector_store %arg7[%c0_14, %c17], %40 {strides = array<i32>} : memref<4x290xf32, #tpu.memory_space<vmem>>, vector<4x256xf32>,
    %c0_15 = arith.constant 0 : index
    %c0_16 = arith.constant 0 : index
    %42 = vector.load %arg7[%c0_15, %c0_16] : memref<4x290xf32, #tpu.memory_space<vmem>>, vector<4x290xf32>
    %cst_17 = arith.constant 0.000000e+00 : f32
    %43 = vector.broadcast %cst_17 : f32 to vector<8x256xf32>
    %44 = vector.extract_strided_slice %42 {offsets = [0, 0], sizes = [4, 256], strides = [1, 1]} : vector<4x290xf32> to vector<4x256xf32>
    %cst_18 = arith.constant 0.000000e+00 : f32
    %45 = vector.shape_cast %18 : vector<1x256xi1> to vector<1x256xi1>
    %46 = vector.broadcast %45 : vector<1x256xi1> to vector<4x256xi1>
    %47 = vector.broadcast %cst_18 : f32 to vector<4x256xf32>
    %48 = arith.select %46, %44, %47 : vector<4x256xi1>, vector<4x256xf32>
    %49 = vector.extract_strided_slice %42 {offsets = [0, 1], sizes = [4, 256], strides = [1, 1]} : vector<4x290xf32> to vector<4x256xf32>
    %50 = vector.extract_strided_slice %42 {offsets = [0, 2], sizes = [4, 256], strides = [1, 1]} : vector<4x290xf32> to vector<4x256xf32>
    %cst_19 = arith.constant 0.000000e+00 : f32
    %51 = vector.shape_cast %36 : vector<1x256xi1> to vector<1x256xi1>
    %52 = vector.broadcast %51 : vector<1x256xi1> to vector<4x256xi1>
    %53 = vector.broadcast %cst_19 : f32 to vector<4x256xf32>
    %54 = arith.select %52, %50, %53 : vector<4x256xi1>, vector<4x256xf32>
    %55 = tpu.concatenate %48, %49, %54 in 0 : vector<4x256xf32>, vector<4x256xf32>, vector<4x256xf32> -> vector<12x256xf32>
    %c0_20 = arith.constant 0 : index
    %c0_21 = arith.constant 0 : index
    %c0_22 = arith.constant 0 : index
    %56 = vector.load %arg2[%c0_20, %c0_21, %c0_22] : memref<3x8x12xf32, #tpu.memory_space<vmem>>, vector<1x8x12xf32>
    %57 = vector.shape_cast %56 : vector<1x8x12xf32> to vector<8x12xf32>
    %cst_23 = arith.constant dense<0.000000e+00> : vector<8x256xf32>
    %58 = tpu.matmul %57, %55, %cst_23 {dimension_numbers = #tpu.dot_dimension_numbers<[1], [0], [0], [1], [0, 0, 1, 1], [], []>} : vector<8x12xf32>, vector<12x256xf32>, vector<8x256xf32> -> vector<8x256xf32>
    %59 = arith.addf %43, %58 : vector<8x256xf32>
    %60 = vector.extract_strided_slice %42 {offsets = [0, 16], sizes = [4, 256], strides = [1, 1]} : vector<4x290xf32> to vector<4x256xf32>
    %cst_24 = arith.constant 0.000000e+00 : f32
    %61 = vector.shape_cast %18 : vector<1x256xi1> to vector<1x256xi1>
    %62 = vector.broadcast %61 : vector<1x256xi1> to vector<4x256xi1>
    %63 = vector.broadcast %cst_24 : f32 to vector<4x256xf32>
    %64 = arith.select %62, %60, %63 : vector<4x256xi1>, vector<4x256xf32>
    %65 = vector.extract_strided_slice %42 {offsets = [0, 17], sizes = [4, 256], strides = [1, 1]} : vector<4x290xf32> to vector<4x256xf32>
    %66 = vector.extract_strided_slice %42 {offsets = [0, 18], sizes = [4, 256], strides = [1, 1]} : vector<4x290xf32> to vector<4x256xf32>
    %cst_25 = arith.constant 0.000000e+00 : f32
    %67 = vector.shape_cast %36 : vector<1x256xi1> to vector<1x256xi1>
    %68 = vector.broadcast %67 : vector<1x256xi1> to vector<4x256xi1>
    %69 = vector.broadcast %cst_25 : f32 to vector<4x256xf32>
    %70 = arith.select %68, %66, %69 : vector<4x256xi1>, vector<4x256xf32>
    %71 = tpu.concatenate %64, %65, %70 in 0 : vector<4x256xf32>, vector<4x256xf32>, vector<4x256xf32> -> vector<12x256xf32>
    %c1 = arith.constant 1 : index
    %c0_26 = arith.constant 0 : index
    %c0_27 = arith.constant 0 : index
    %72 = vector.load %arg2[%c1, %c0_26, %c0_27] : memref<3x8x12xf32, #tpu.memory_space<vmem>>, vector<1x8x12xf32>
    %73 = vector.shape_cast %72 : vector<1x8x12xf32> to vector<8x12xf32>
    %cst_28 = arith.constant dense<0.000000e+00> : vector<8x256xf32>
    %74 = tpu.matmul %73, %71, %cst_28 {dimension_numbers = #tpu.dot_dimension_numbers<[1], [0], [0], [1], [0, 0, 1, 1], [], []>} : vector<8x12xf32>, vector<12x256xf32>, vector<8x256xf32> -> vector<8x256xf32>
    %75 = arith.addf %59, %74 : vector<8x256xf32>
    %76 = vector.extract_strided_slice %42 {offsets = [0, 32], sizes = [4, 256], strides = [1, 1]} : vector<4x290xf32> to vector<4x256xf32>
    %cst_29 = arith.constant 0.000000e+00 : f32
    %77 = vector.shape_cast %18 : vector<1x256xi1> to vector<1x256xi1>
    %78 = vector.broadcast %77 : vector<1x256xi1> to vector<4x256xi1>
    %79 = vector.broadcast %cst_29 : f32 to vector<4x256xf32>
    %80 = arith.select %78, %76, %79 : vector<4x256xi1>, vector<4x256xf32>
    %81 = vector.extract_strided_slice %42 {offsets = [0, 33], sizes = [4, 256], strides = [1, 1]} : vector<4x290xf32> to vector<4x256xf32>
    %82 = vector.extract_strided_slice %42 {offsets = [0, 34], sizes = [4, 256], strides = [1, 1]} : vector<4x290xf32> to vector<4x256xf32>
    %cst_30 = arith.constant 0.000000e+00 : f32
    %83 = vector.shape_cast %36 : vector<1x256xi1> to vector<1x256xi1>
    %84 = vector.broadcast %83 : vector<1x256xi1> to vector<4x256xi1>
    %85 = vector.broadcast %cst_30 : f32 to vector<4x256xf32>
    %86 = arith.select %84, %82, %85 : vector<4x256xi1>, vector<4x256xf32>
    %87 = tpu.concatenate %80, %81, %86 in 0 : vector<4x256xf32>, vector<4x256xf32>, vector<4x256xf32> -> vector<12x256xf32>
    %c2 = arith.constant 2 : index
    %c0_31 = arith.constant 0 : index
    %c0_32 = arith.constant 0 : index
    %88 = vector.load %arg2[%c2, %c0_31, %c0_32] : memref<3x8x12xf32, #tpu.memory_space<vmem>>, vector<1x8x12xf32>
    %89 = vector.shape_cast %88 : vector<1x8x12xf32> to vector<8x12xf32>
    %cst_33 = arith.constant dense<0.000000e+00> : vector<8x256xf32>
    %90 = tpu.matmul %89, %87, %cst_33 {dimension_numbers = #tpu.dot_dimension_numbers<[1], [0], [0], [1], [0, 0, 1, 1], [], []>} : vector<8x12xf32>, vector<12x256xf32>, vector<8x256xf32> -> vector<8x256xf32>
    %91 = arith.addf %75, %90 : vector<8x256xf32>
    %c0_34 = arith.constant 0 : index
    %c0_35 = arith.constant 0 : index
    %c0_36 = arith.constant 0 : index
    %92 = vector.load %arg3[%c0_34, %c0_35, %c0_36] : memref<1x8x1xf32, #tpu.memory_space<vmem>>, vector<1x8x1xf32>
    %93 = vector.shape_cast %92 : vector<1x8x1xf32> to vector<8x1xf32>
    %94 = vector.broadcast %93 : vector<8x1xf32> to vector<8x256xf32>
    %95 = arith.addf %91, %94 : vector<8x256xf32>
    %96 = math.absf %95 : vector<8x256xf32>
    %cst_37 = arith.constant 0.000000e+00 : f32
    %97 = vector.broadcast %cst_37 : f32 to vector<8x256xf32>
    %98 = arith.subf %97, %96 : vector<8x256xf32>
    %99 = math.exp %98 : vector<8x256xf32>
    %cst_38 = arith.constant 0.000000e+00 : f32
    %100 = vector.broadcast %cst_38 : f32 to vector<8x256xf32>
    %101 = arith.cmpf oge, %95, %100 : vector<8x256xf32>
    %cst_39 = arith.constant 1.000000e+00 : f32
    %102 = vector.broadcast %cst_39 : f32 to vector<8x256xf32>
    %103 = arith.select %101, %102, %99 : vector<8x256xi1>, vector<8x256xf32>
    %104 = arith.mulf %95, %103 : vector<8x256xf32>
    %cst_40 = arith.constant 1.000000e+00 : f32
    %105 = vector.broadcast %cst_40 : f32 to vector<8x256xf32>
    %106 = arith.addf %105, %99 : vector<8x256xf32>
    %107 = arith.divf %104, %106 : vector<8x256xf32>
    %cst_41 = arith.constant 0.000000e+00 : f32
    %108 = vector.broadcast %cst_41 : f32 to vector<8x290xf32>
    %c0_42 = arith.constant 0 : index
    %c0_43 = arith.constant 0 : index
    %109 = vector.load %arg8[%c0_42, %c0_43] : memref<8x290xf32, #tpu.memory_space<vmem>>, vector<8x290xf32>
    tpu.vector_store %arg8[%c0_42, %c0_43], %108 {strides = array<i32>} : memref<8x290xf32, #tpu.memory_space<vmem>>, vector<8x290xf32>,
    %c0_44 = arith.constant 0 : index
    %c17_45 = arith.constant 17 : index
    %110 = vector.load %arg8[%c0_44, %c17_45] : memref<8x290xf32, #tpu.memory_space<vmem>>, vector<8x256xf32>
    tpu.vector_store %arg8[%c0_44, %c17_45], %107 {strides = array<i32>} : memref<8x290xf32, #tpu.memory_space<vmem>>, vector<8x256xf32>,
    %c0_46 = arith.constant 0 : index
    %c0_47 = arith.constant 0 : index
    %111 = vector.load %arg8[%c0_46, %c0_47] : memref<8x290xf32, #tpu.memory_space<vmem>>, vector<8x290xf32>
    %cst_48 = arith.constant 0.000000e+00 : f32
    %112 = vector.broadcast %cst_48 : f32 to vector<8x256xf32>
    %113 = vector.extract_strided_slice %111 {offsets = [0, 0], sizes = [8, 256], strides = [1, 1]} : vector<8x290xf32> to vector<8x256xf32>
    %cst_49 = arith.constant 0.000000e+00 : f32
    %114 = vector.shape_cast %18 : vector<1x256xi1> to vector<1x256xi1>
    %115 = vector.broadcast %114 : vector<1x256xi1> to vector<8x256xi1>
    %116 = vector.broadcast %cst_49 : f32 to vector<8x256xf32>
    %117 = arith.select %115, %113, %116 : vector<8x256xi1>, vector<8x256xf32>
    %118 = vector.extract_strided_slice %111 {offsets = [0, 1], sizes = [8, 256], strides = [1, 1]} : vector<8x290xf32> to vector<8x256xf32>
    %119 = vector.extract_strided_slice %111 {offsets = [0, 2], sizes = [8, 256], strides = [1, 1]} : vector<8x290xf32> to vector<8x256xf32>
    %cst_50 = arith.constant 0.000000e+00 : f32
    %120 = vector.shape_cast %36 : vector<1x256xi1> to vector<1x256xi1>
    %121 = vector.broadcast %120 : vector<1x256xi1> to vector<8x256xi1>
    %122 = vector.broadcast %cst_50 : f32 to vector<8x256xf32>
    %123 = arith.select %121, %119, %122 : vector<8x256xi1>, vector<8x256xf32>
    %124 = tpu.concatenate %117, %118, %123 in 0 : vector<8x256xf32>, vector<8x256xf32>, vector<8x256xf32> -> vector<24x256xf32>
    %c0_51 = arith.constant 0 : index
    %c0_52 = arith.constant 0 : index
    %c0_53 = arith.constant 0 : index
    %125 = vector.load %arg4[%c0_51, %c0_52, %c0_53] : memref<3x8x24xf32, #tpu.memory_space<vmem>>, vector<1x8x24xf32>
    %126 = vector.shape_cast %125 : vector<1x8x24xf32> to vector<8x24xf32>
    %cst_54 = arith.constant dense<0.000000e+00> : vector<8x256xf32>
    %127 = tpu.matmul %126, %124, %cst_54 {dimension_numbers = #tpu.dot_dimension_numbers<[1], [0], [0], [1], [0, 0, 1, 1], [], []>} : vector<8x24xf32>, vector<24x256xf32>, vector<8x256xf32> -> vector<8x256xf32>
    %128 = arith.addf %112, %127 : vector<8x256xf32>
    %129 = vector.extract_strided_slice %111 {offsets = [0, 16], sizes = [8, 256], strides = [1, 1]} : vector<8x290xf32> to vector<8x256xf32>
    %cst_55 = arith.constant 0.000000e+00 : f32
    %130 = vector.shape_cast %18 : vector<1x256xi1> to vector<1x256xi1>
    %131 = vector.broadcast %130 : vector<1x256xi1> to vector<8x256xi1>
    %132 = vector.broadcast %cst_55 : f32 to vector<8x256xf32>
    %133 = arith.select %131, %129, %132 : vector<8x256xi1>, vector<8x256xf32>
    %134 = vector.extract_strided_slice %111 {offsets = [0, 17], sizes = [8, 256], strides = [1, 1]} : vector<8x290xf32> to vector<8x256xf32>
    %135 = vector.extract_strided_slice %111 {offsets = [0, 18], sizes = [8, 256], strides = [1, 1]} : vector<8x290xf32> to vector<8x256xf32>
    %cst_56 = arith.constant 0.000000e+00 : f32
    %136 = vector.shape_cast %36 : vector<1x256xi1> to vector<1x256xi1>
    %137 = vector.broadcast %136 : vector<1x256xi1> to vector<8x256xi1>
    %138 = vector.broadcast %cst_56 : f32 to vector<8x256xf32>
    %139 = arith.select %137, %135, %138 : vector<8x256xi1>, vector<8x256xf32>
    %140 = tpu.concatenate %133, %134, %139 in 0 : vector<8x256xf32>, vector<8x256xf32>, vector<8x256xf32> -> vector<24x256xf32>
    %c1_57 = arith.constant 1 : index
    %c0_58 = arith.constant 0 : index
    %c0_59 = arith.constant 0 : index
    %141 = vector.load %arg4[%c1_57, %c0_58, %c0_59] : memref<3x8x24xf32, #tpu.memory_space<vmem>>, vector<1x8x24xf32>
    %142 = vector.shape_cast %141 : vector<1x8x24xf32> to vector<8x24xf32>
    %cst_60 = arith.constant dense<0.000000e+00> : vector<8x256xf32>
    %143 = tpu.matmul %142, %140, %cst_60 {dimension_numbers = #tpu.dot_dimension_numbers<[1], [0], [0], [1], [0, 0, 1, 1], [], []>} : vector<8x24xf32>, vector<24x256xf32>, vector<8x256xf32> -> vector<8x256xf32>
    %144 = arith.addf %128, %143 : vector<8x256xf32>
    %145 = vector.extract_strided_slice %111 {offsets = [0, 32], sizes = [8, 256], strides = [1, 1]} : vector<8x290xf32> to vector<8x256xf32>
    %cst_61 = arith.constant 0.000000e+00 : f32
    %146 = vector.shape_cast %18 : vector<1x256xi1> to vector<1x256xi1>
    %147 = vector.broadcast %146 : vector<1x256xi1> to vector<8x256xi1>
    %148 = vector.broadcast %cst_61 : f32 to vector<8x256xf32>
    %149 = arith.select %147, %145, %148 : vector<8x256xi1>, vector<8x256xf32>
    %150 = vector.extract_strided_slice %111 {offsets = [0, 33], sizes = [8, 256], strides = [1, 1]} : vector<8x290xf32> to vector<8x256xf32>
    %151 = vector.extract_strided_slice %111 {offsets = [0, 34], sizes = [8, 256], strides = [1, 1]} : vector<8x290xf32> to vector<8x256xf32>
    %cst_62 = arith.constant 0.000000e+00 : f32
    %152 = vector.shape_cast %36 : vector<1x256xi1> to vector<1x256xi1>
    %153 = vector.broadcast %152 : vector<1x256xi1> to vector<8x256xi1>
    %154 = vector.broadcast %cst_62 : f32 to vector<8x256xf32>
    %155 = arith.select %153, %151, %154 : vector<8x256xi1>, vector<8x256xf32>
    %156 = tpu.concatenate %149, %150, %155 in 0 : vector<8x256xf32>, vector<8x256xf32>, vector<8x256xf32> -> vector<24x256xf32>
    %c2_63 = arith.constant 2 : index
    %c0_64 = arith.constant 0 : index
    %c0_65 = arith.constant 0 : index
    %157 = vector.load %arg4[%c2_63, %c0_64, %c0_65] : memref<3x8x24xf32, #tpu.memory_space<vmem>>, vector<1x8x24xf32>
    %158 = vector.shape_cast %157 : vector<1x8x24xf32> to vector<8x24xf32>
    %cst_66 = arith.constant dense<0.000000e+00> : vector<8x256xf32>
    %159 = tpu.matmul %158, %156, %cst_66 {dimension_numbers = #tpu.dot_dimension_numbers<[1], [0], [0], [1], [0, 0, 1, 1], [], []>} : vector<8x24xf32>, vector<24x256xf32>, vector<8x256xf32> -> vector<8x256xf32>
    %160 = arith.addf %144, %159 : vector<8x256xf32>
    %c0_67 = arith.constant 0 : index
    %c0_68 = arith.constant 0 : index
    %161 = vector.load %arg5[%c0_67, %c0_68] : memref<8x1xf32, #tpu.memory_space<vmem>>, vector<8x1xf32>
    %162 = vector.broadcast %161 : vector<8x1xf32> to vector<8x256xf32>
    %163 = arith.addf %160, %162 : vector<8x256xf32>
    %c0_69 = arith.constant 0 : index
    %c0_70 = arith.constant 0 : index
    %c0_71 = arith.constant 0 : index
    %164 = vector.load %arg6[%c0_69, %c0_70, %c0_71] : memref<1x8x256xf32, #tpu.memory_space<vmem>>, vector<1x8x256xf32>
    %165 = vector.shape_cast %164 : vector<1x8x256xf32> to vector<8x256xf32>
    %166 = vector.shape_cast %163 : vector<8x256xf32> to vector<1x8x256xf32>
    tpu.vector_store %arg6[%c0_69, %c0_70, %c0_71], %166 {strides = array<i32>} : memref<1x8x256xf32, #tpu.memory_space<vmem>>, vector<1x8x256xf32>,
    return
  }
  func.func @transform_0(%arg0: i32) -> (i32, i32, i32) {
    %c0_i32 = arith.constant 0 : i32
    %c0_i32_0 = arith.constant 0 : i32
    %c0_i32_1 = arith.constant 0 : i32
    return %arg0, %c0_i32, %c0_i32_0 : i32, i32, i32
  }
  func.func @transform_1(%arg0: i32) -> (i32, i32, i32) {
    %c0_i32 = arith.constant 0 : i32
    %c0_i32_0 = arith.constant 0 : i32
    %c0_i32_1 = arith.constant 0 : i32
    %c0_i32_2 = arith.constant 0 : i32
    return %c0_i32, %c0_i32_0, %c0_i32_1 : i32, i32, i32
  }
  func.func @transform_2(%arg0: i32) -> (i32, i32, i32) {
    %c0_i32 = arith.constant 0 : i32
    %c0_i32_0 = arith.constant 0 : i32
    %c0_i32_1 = arith.constant 0 : i32
    return %arg0, %c0_i32, %c0_i32_0 : i32, i32, i32
  }
  func.func @transform_3(%arg0: i32) -> (i32, i32, i32) {
    %c0_i32 = arith.constant 0 : i32
    %c0_i32_0 = arith.constant 0 : i32
    %c0_i32_1 = arith.constant 0 : i32
    %c0_i32_2 = arith.constant 0 : i32
    return %c0_i32, %c0_i32_0, %c0_i32_1 : i32, i32, i32
  }
  func.func @transform_4(%arg0: i32) -> (i32, i32) {
    %c0_i32 = arith.constant 0 : i32
    %c0_i32_0 = arith.constant 0 : i32
    %c0_i32_1 = arith.constant 0 : i32
    return %c0_i32, %c0_i32_0 : i32, i32
  }
  func.func @transform_5(%arg0: i32) -> (i32, i32, i32) {
    %c0_i32 = arith.constant 0 : i32
    %c0_i32_0 = arith.constant 0 : i32
    %c0_i32_1 = arith.constant 0 : i32
    return %arg0, %c0_i32, %c0_i32_0 : i32, i32, i32
  }
}

</mosaic_0001>

<bundles_post_ra>
// kernel: fused_unet_block_apply.1
= control target key start
LH: loop header
LB: loop body
LE: loop exit
PB: predicated region body
PF: predicated region fallthrough
CT: control target
= control target key end

     0   :  { %s1347_s18 = smov 0   ;;  %s1626_s0 = inlined_call_operand.vmem [shape: f32[2,4,256], index: 0, kind: input, shape index: {}]   ;;  %s1627_s1 = inlined_call_operand.vmem [shape: f32[3,8,12], index: 1, kind: input, shape index: {}]   ;;  %s1628_s2 = inlined_call_operand.vmem [shape: f32[2,8,1], index: 2, kind: input, shape index: {}]   ;;  %s1629_s3 = inlined_call_operand.vmem [shape: f32[3,8,24], index: 3, kind: input, shape index: {}]   ;;  %s1630_s4 = inlined_call_operand.vmem [shape: f32[8,1], index: 4, kind: input, shape index: {}]   ;;  %s1631_s5 = inlined_call_operand.vmem [shape: f32[2,8,256], index: 5, kind: output, shape index: {}]  }
   0x1 LB: > { %s1113_s19 = sadd.s32 4294967295, %s1303_s18   ;;  %p1117_p0 = scmp.ge.s32.totalorder %s1303_s18, 1  ;;  %s1303_s18 = sphi %s1347_s18, %s15_s18  }
   0x2   : > { %p196_p1 = scmp.lt.s32.totalorder %s1303_s18, 3 }
   0x4   : > { %p197_p2 = pnand %p1117_p0, %p196_p1 }
   0x5   : > { %p228_p3 = scmp.lt.s32.totalorder (!%p197_p2), %s1113_s19, 1  ;;  %vm274_vm0 = vcmask (!%p197_p2), 273408   ;;  %v1305_v0 = vmov (!%p197_p2), 0.0   ;;  %s1306_s24 = smov (!%p197_p2), 17   ;;  %vm285_vm1 = vcmask (!%p197_p2), 1043592   ;;  %vm286_vm2 = vcmask (!%p197_p2), 1047556  }
   0x6   : > { %200 = sbr.rel (%p197_p2) target bundleno = 1035 (0x40b), region = 40  ;;  %273 = vst [vmem:[#allocation2] sm:$0xff] (!%p197_p2), %v1305_v0  ;;  %275 = vst.msk [vmem:[#allocation2 + $0x8] sm:$0xf] (!%p197_p2), %vm274_vm0, %v1305_v0  ;;  %452 = vmatprep.mubr.f32.mxu0 (!%p197_p2), %v1305_v0  ;;  %843 = vmatprep.mubr.f32.mxu1 (!%p197_p2), %v1305_v0  ;;  %vm281_vm3 = vcmask (!%p197_p2), 138240   ;;  %vm289_vm4 = vcmask (!%p197_p2), 134144   ;;  %v242_v14 = vlaneseq (!%p197_p2) }
   0x7   : > { %690 = vst [vmem:[#allocation3] sm:$0xff] (!%p197_p2), %v1305_v0  ;;  %vm287_vm5 = vmor (!%p197_p2), %vm286_vm2, %vm285_vm1  ;;  %s1307_s25 = smov (!%p197_p2), 112   ;;  %s1308_s26 = smov (!%p197_p2), 111   ;;  %v1314_v12 = vmov (!%p197_p2), 0   ;;  %vm343_vm7 = vcmask (!%p197_p2), 916480   ;;  %vm369_vm8 = vcmask (!%p197_p2), 908288  }
   0x8   : > { %s1309_s27 = smov (!%p197_p2), 110   ;;  %s1310_s28 = smov (!%p197_p2), 127   ;;  %1259 = vset.pattern.permute.xlu1 (!%p197_p2), %v1314_v12  ;;  %1285 = vset.pattern.permute.xlu0 (!%p197_p2), %v1314_v12  ;;  %v243_v15 = vand.u32 (!%p197_p2), 127, %v242_v14  ;;  %vm356_vm10 = vcmask (!%p197_p2), 900096   ;;  %vm328_vm12 = vcmask (!%p197_p2), 1039360   ;;  %vm333_vm14 = vcmask (!%p197_p2), 1043456  }
   0x9   : > { %s1311_s29 = smov (!%p197_p2), 126   ;;  %s1312_s30 = smov (!%p197_p2), 96   ;;  %vm1632_vm15 = vcmask (!%p197_p2), 1031168   ;;  %vm1316_vm0 = vmmov (!%p197_p2), 1   ;;  %v1123_v63 = vld [vmem:[%s1627_s1 + $0x8] sm:$0xff] (!%p197_p2)  ;;  %vm378_vm2 = vcmask (!%p197_p2), 97280  }
   0xa   : > { %s1313_s6 = smov (!%p197_p2), 94   ;;  %s1315_s10 = smov (!%p197_p2), 95   ;;  %v244_v17 = vadd.s32 (!%p197_p2), 128, %v243_v15  ;;  %v249_v20 = vand.u32 (!%p197_p2), 15, %v243_v15  ;;  %vm1442_vm1 = vmpackc.low (!%p197_p2), %vm333_vm14, %vm1316_vm0 }
   0xc   : > { %v256_v21 = vand.u32 (!%p197_p2), 15, %v244_v17  ;;  %vm1408_vm6 = vcmp.ne.s32.totalorder (!%p197_p2), %v249_v20, 0  ;;  %vm1423_vm13 = vcmp.ne.s32.totalorder (!%p197_p2), %v249_v20, 15  ;;  %v336_v20 = vld [vmem:[%s1627_s1] sm:$0xff] (!%p197_p2) }
   0xd   : > { %s1653_s19 = smov (!%p228_p3, %s1113_s19), 1 }
   0xe   : > { %s1153_s20 = sshll.u32 %s1653_s19, 3  ;;  %vm1412_vm9 = vcmp.ne.s32.totalorder %v256_v21, 0  ;;  %vm1418_vm11 = vcmp.ne.s32.totalorder %v256_v21, 15 }
   0xf   : > { %s232_s23 = scalar_lea.vmem %s1626_s0, %s1153_s20  ;;  %s236_s9 = scalar_lea.vmem %s1628_s2, %s1153_s20 }
  0x10   : > { %v276_v1 = vld [vmem:[%s232_s23] sm:$0xff] }
  0x11   : > { %278 = vrot.lane.b32.xlu0 %v276_v1, %s1306_s24  ;;  %v662_v13 = vld [vmem:[%s236_s9] sm:$0xff] }
  0x83   : > { %v279_v2 = vpop.permute.xlu0 %278 }
  0x84   : > { %v280_v3 = vrot.slane %v279_v2, 4 }
  0x86   : > { %v282_v4 = vsel %vm281_vm3, %v280_v3, %v279_v2  ;;  %290 = vst.msk [vmem:[#allocation2 + $0x8] sm:$0xf] %vm289_vm4, %v280_v3  ;;  %vm545_vm4 = vcmask 785408  }
  0x87   : > { %288 = vst.msk [vmem:[#allocation2] sm:$0xff] %vm287_vm5, %v282_v4  ;;  %vm1633_vm5 = vcmask 769024  }
  0x8d   : > { %v292_v5 = vld [vmem:[#allocation2 + $0x8] sm:$0xf] }
  0x8e   : > { %v1370_v6 = vld [vmem:[#allocation2] sm:$0xff]  ;;  %v321_v7 = vcombine.low %v292_v5, %v292_v5 }
  0x8f   : > { %337 = vrot.lane.b32.xlu1 %v1370_v6, %s1307_s25  ;;  %v1377_v9 = vcombine.high %v1370_v6, %v1370_v6  ;;  %v320_v11 = vcombine.low %v1370_v6, %v1370_v6 }
  0x90   : > { %v1219_v8 = vpack.i.bf16 %v321_v7, %v1370_v6 }
  0x91   : > { %v1234_v10 = vpack.i.bf16 %v292_v5, %v1377_v9  ;;  %v301_v60 = vsel %vm1412_vm9, %v1377_v9, 0.0 }
  0x92   : > { %1220 = vrot.lane.b32.xlu0 %v1219_v8, %s1308_s26 }
  0x93   : > { %350 = vrot.lane.b32.xlu1 %v1370_v6, %s1309_s27 }
  0x96   : > { %1225 = vrot.lane.b32.xlu0 %v1219_v8, %s1310_s28 }
  0x97   : > { %1235 = vrot.lane.b32.xlu1 %v1234_v10, %s1309_s27 }
  0x9a   : > { %1230 = vrot.lane.b32.xlu0 %v1234_v10, %s1307_s25 }
  0x9b   : > { %307 = vrot.lane.b32.xlu1 %v1370_v6, %s1311_s29 }
  0x9e   : > { %363 = vrot.lane.b32.xlu0 %v320_v11, %s1308_s26 }
  0x9f   : > { %1240 = vrot.lane.b32.xlu1 %v1234_v10, %s1311_s29 }
  0xa2   : > { %539 = vrot.lane.b32.xlu0 %v1370_v6, %s1312_s30 }
  0xa3   : > { %1250 = vrot.lane.b32.xlu1 %v1234_v10, %s1312_s30 }
  0xa6   : > { %322 = vrot.lane.b32.xlu0 %v320_v11, %s1310_s28 }
  0xa7   : > { %1255 = vrot.lane.b32.xlu1 %v1234_v10, %s1313_s6 }
  0xaa   : > { %1245 = vrot.lane.b32.xlu0 %v1219_v8, %s1315_s10  ;;  %v300_v8 = vsel %vm1408_vm6, %v1370_v6, 0.0 }
  0xab   : > { %552 = vrot.lane.b32.xlu1 %v1370_v6, %s1313_s6 }
  0xae   : > { %565 = vrot.lane.b32.xlu0 %v320_v11, %s1315_s10 }
  0xaf   : > { %665 = vperm.xlu1 %1259, %v662_v13  }
 0x101   : > { %v338_v16 = vpop.permute.xlu1 %337 }
 0x104   : > { %v1221_v18 = vpop.permute.xlu0 %1220 }
 0x105   : > { %v351_v19 = vpop.permute.xlu1 %350  ;;  %v1223_v28 = vunpack.i.h.bf16 %v1221_v18  ;;  %v1222_v29 = vunpack.i.l.bf16 %v1221_v18 }
 0x107   : > { %v371_v45 = vsel %vm369_vm8, %v1222_v29, %v1223_v28 }
 0x108   : > { %v1406_v22 = vpop.permute.xlu0 %1225 }
 0x109   : > { %v1236_v23 = vpop.permute.xlu1 %1235  ;;  %v1228_v30 = vunpack.i.h.bf16 %v1406_v22  ;;  %v1227_v31 = vunpack.i.l.bf16 %v1406_v22 }
 0x10a   : > { %v1238_v24 = vunpack.i.h.bf16 %v1236_v23  ;;  %v1237_v25 = vunpack.i.l.bf16 %v1236_v23 }
 0x10b   : > { %v330_v46 = vsel %vm328_vm12, %v1227_v31, %v1228_v30 }
 0x10c   : > { %v1231_v32 = vpop.permute.xlu0 %1230  ;;  %v358_v37 = vsel %vm356_vm10, %v1237_v25, %v1238_v24  ;;  %v357_v39 = vsel %vm356_vm10, %v351_v19, %v1237_v25  ;;  %v335_v1 = vsel %vm333_vm14, %v301_v60, %v330_v46 }
 0x10d   : > { %v1233_v33 = vunpack.i.h.bf16 %v1231_v32  ;;  %v1232_v34 = vunpack.i.l.bf16 %v1231_v32  ;;  %v308_v35 = vpop.permute.xlu1 %307  ;;  %v362_v49 = vsel %vm1418_vm11, %v358_v37, 0.0  ;;  %v361_v52 = vsel %vm1423_vm13, %v357_v39, 0.0  ;;  %v1130_v39 = vld [vmem:[%s1627_s1 + $0x10] sm:$0xff] }
 0x10f   : > { %v344_v40 = vsel %vm343_vm7, %v338_v16, %v1232_v34  ;;  %v345_v41 = vsel %vm343_vm7, %v1232_v34, %v1233_v33 }
 0x110   : > { %v364_v42 = vpop.permute.xlu0 %363  ;;  %v348_v43 = vsel %vm1408_vm6, %v344_v40, 0.0  ;;  %v349_v44 = vsel %vm1412_vm9, %v345_v41, 0.0 }
 0x111   : > { %v370_v47 = vsel %vm369_vm8, %v364_v42, %v1222_v29  ;;  %v1241_v48 = vpop.permute.xlu1 %1240  ;;  %v375_v50 = vsel %vm333_vm14, %v349_v44, %v371_v45 }
 0x112   : > { %v374_v53 = vsel %vm333_vm14, %v348_v43, %v370_v47  ;;  %v1243_v54 = vunpack.i.h.bf16 %v1241_v48  ;;  %v1242_v55 = vunpack.i.l.bf16 %v1241_v48  ;;  %v1155_v56 = vpack.c.bf16 %v362_v49, %v375_v50 }
 0x113   : > { %v1158_v57 = vpack.c.bf16 %v361_v52, %v374_v53 }
 0x114   : > { %v315_v58 = vsel %vm1632_vm15, %v1242_v55, %v1243_v54  ;;  %v540_v59 = vpop.permute.xlu0 %539  ;;  %1157 = vmatprep.subr.msk.bf16.mxu0 %vm1442_vm1, %v1155_v56  ;;  %v314_v3 = vsel %vm1632_vm15, %v308_v35, %v1242_v55  ;;  %vm571_vm15 = vcmask 777216  }
 0x115   : > { %v319_v61 = vsel %vm1418_vm11, %v315_v58, 0.0  ;;  %v1251_v62 = vpop.permute.xlu1 %1250  ;;  %1160 = vmatpush1.bf16.msk.msra.mxu0 %vm1442_vm1, %v1158_v57  ;;  %v318_v11 = vsel %vm1423_vm13, %v314_v3, 0.0 }
 0x116   : > { %v1161_v2 = vpack.c.bf16 %v319_v61, %v335_v1  ;;  %v1253_v4 = vunpack.i.h.bf16 %v1251_v62  ;;  %v1252_v5 = vunpack.i.l.bf16 %v1251_v62 }
 0x118   : > { %v323_v7 = vpop.permute.xlu0 %322  ;;  %1126 = vmatmul.mubr.msk.f32.vlgmr.msra.gmra.mrb[0].mxu0 %vm378_vm2, %v1123_v63  ;;  %1163 = vmatprep.subr.msk.bf16.mxu0 %vm1442_vm1, %v1161_v2  ;;  %v547_v16 = vsel %vm545_vm4, %v1252_v5, %v1253_v4  ;;  %v546_v22 = vsel %vm545_vm4, %v540_v59, %v1252_v5 }
 0x119   : > { %v329_v9 = vsel %vm328_vm12, %v323_v7, %v1227_v31  ;;  %v1256_v10 = vpop.permute.xlu1 %1255  ;;  %532 = vmatprep.mubr.f32.mxu0 %v1305_v0  ;;  %v551_v23 = vsel %vm1412_vm9, %v547_v16, 0.0  ;;  %v550_v31 = vsel %vm1408_vm6, %v546_v22, 0.0  ;;  %v1036_v7 = vld [vmem:[%s1630_s4] sm:$0xff] }
 0x11a   : > { %v334_v12 = vsel %vm333_vm14, %v300_v8, %v329_v9  ;;  %v1258_v13 = vunpack.i.h.bf16 %v1256_v10  ;;  %v1257_v14 = vunpack.i.l.bf16 %v1256_v10 }
 0x11b   : > { %v1164_v15 = vpack.c.bf16 %v318_v11, %v334_v12 }
 0x11c   : > { %v1246_v17 = vpop.permute.xlu0 %1245  ;;  %v560_v21 = vsel %vm1633_vm5, %v1257_v14, %v1258_v13 }
 0x11d   : > { %v1248_v18 = vunpack.i.h.bf16 %v1246_v17  ;;  %v1247_v6 = vunpack.i.l.bf16 %v1246_v17  ;;  %v553_v19 = vpop.permute.xlu1 %552  ;;  %1166 = vmatpush1.bf16.msk.msra.mxu0 %vm1442_vm1, %v1164_v15  ;;  %v564_v29 = vsel %vm1418_vm11, %v560_v21, 0.0 }
 0x11e   : > { %v559_v24 = vsel %vm1633_vm5, %v553_v19, %v1257_v14  ;;  %vm704_vm5 = vcmask 1047688  }
 0x11f   : > { %v573_v25 = vsel %vm571_vm15, %v1247_v6, %v1248_v18  ;;  %v563_v34 = vsel %vm1423_vm13, %v559_v24, 0.0 }
 0x120   : > { %v566_v28 = vpop.permute.xlu0 %565  ;;  %1129 = vmatmul.mubr.msk.f32.vlgmr.msra.gmra.mrb[0].mxu0 %vm378_vm2, %v336_v20  ;;  %v577_v30 = vsel %vm333_vm14, %v551_v23, %v573_v25 }
 0x121   : > { %v572_v32 = vsel %vm571_vm15, %v566_v28, %v1247_v6  ;;  %v1167_v33 = vpack.c.bf16 %v564_v29, %v577_v30  ;;  %653 = vmatprep.mubr.f32.mxu0 %v1305_v0 }
 0x122   : > { %v576_v35 = vsel %vm333_vm14, %v550_v31, %v572_v32  ;;  %vm692_vm14 = vcmask 277504  }
 0x123   : > { %v1170_v37 = vpack.c.bf16 %v563_v34, %v576_v35  ;;  %1169 = vmatprep.subr.msk.bf16.mxu0 %vm1442_vm1, %v1167_v33  ;;  %693 = vst.msk [vmem:[#allocation3 + $0x10] sm:$0xff] %vm692_vm14, %v1305_v0 }
 0x125   : > { %1172 = vmatpush1.bf16.msk.msra.mxu0 %vm1442_vm1, %v1170_v37  ;;  %v1134_v37 = vld [vmem:[%s1629_s3 + $0x8] sm:$0xff] }
 0x128   : > { %1133 = vmatmul.mubr.msk.f32.vlgmr.msra.gmra.mrb[0].mxu0 %vm378_vm2, %v1130_v39 }
 0x12e   : > { %v666_v40 = vpop.permute.xlu1 %665 }
 0x1fb   : > { %v655_v41 = vpop.f32.mrb[0].mxu0 }
 0x1fc   : > { %v668_v42 = vadd.f32 %v666_v40, %v655_v41  ;;  %v657_v43 = vpop.f32.mrb[1].mxu0 }
 0x1fd   : > { %v669_v44 = vadd.f32 %v666_v40, %v657_v43 }
 0x1fe   : > { %v670_v45 = vand.u32 2147483647, %v668_v42  ;;  %vm678_vm1 = vcmp.ge.f32.partialorder %v668_v42, 0.0 }
 0x1ff   : > { %v671_v46 = vand.u32 2147483647, %v669_v44  ;;  %vm679_vm2 = vcmp.ge.f32.partialorder %v669_v44, 0.0 }
 0x200   : > { %v672_v47 = vsub.f32 0.0, %v670_v45 }
 0x201   : > { %v673_v48 = vsub.f32 0.0, %v671_v46 }
 0x202   : > { %v674_v49 = vmul.f32 1.442695, %v672_v47 }
 0x203   : > { %v676_v50 = vmul.f32 1.442695, %v673_v48 }
 0x204   : > { %1289 = vpow2.f32 %v674_v49 }
 0x205   : > { %1291 = vpow2.f32 %v676_v50 }
 0x20e   : > { %v1290_v51 = vpop.eup %1289 }
 0x20f   : > { %v1292_v52 = vpop.eup %1291  ;;  %v684_v53 = vadd.f32 1.0, %v1290_v51  ;;  %v680_v55 = vsel %vm678_vm1, 1.0, %v1290_v51 }
 0x210   : > { %v685_v54 = vadd.f32 1.0, %v1292_v52  ;;  %v681_v56 = vsel %vm679_vm2, 1.0, %v1292_v52  ;;  %v682_v57 = vmul.f32 %v680_v55, %v668_v42  ;;  %v738_v52 = vld [vmem:[%s1629_s3] sm:$0xff] }
 0x211   : > { %1293 = vrcp.f32 %v684_v53  ;;  %v683_v59 = vmul.f32 %v681_v56, %v669_v44 }
 0x212   : > { %1295 = vrcp.f32 %v685_v54 }
 0x21b   : > { %v1294_v58 = vpop.eup %1293 }
 0x21c   : > { %v1296_v60 = vpop.eup %1295  ;;  %v687_v61 = vmul.f32 %v1294_v58, %v682_v57 }
 0x21d   : > { %v689_v62 = vmul.f32 %v1296_v60, %v683_v59 }
 0x21e   : > { %696 = vrot.lane.b32.xlu0 %v687_v61, %s1306_s24 }
 0x21f   : > { %698 = vrot.lane.b32.xlu1 %v689_v62, %s1306_s24 }
 0x290   : > { %v697_v63 = vpop.permute.xlu0 %696 }
 0x291   : > { %705 = vst.msk [vmem:[#allocation3] sm:$0xff] %vm704_vm5, %v697_v63  ;;  %v699_v1 = vpop.permute.xlu1 %698  ;;  %vm1563_vm5 = vmpackc.low %vm1316_vm0, %vm1408_vm6  ;;  %vm775_vm6 = vcmask 195584  }
 0x292   : > { %v1510_v2 = vsel %vm281_vm3, %v697_v63, %v699_v1  ;;  %707 = vst.msk [vmem:[#allocation3 + $0x10] sm:$0xff] %vm281_vm3, %v699_v1  ;;  %vm1554_vm3 = vmpackc.low %vm1316_vm0, %vm1412_vm9  ;;  %vm1650_vm9 = vcmask 769024   ;;  %v1145_v1 = vld [vmem:[%s1629_s3 + $0x10] sm:$0xff] }
 0x298   : > { %v1513_v3 = vld [vmem:[#allocation3] sm:$0xff] }
 0x299   : > { %739 = vrot.lane.b32.xlu0 %v1513_v3, %s1307_s25  ;;  %763 = vrot.lane.b32.xlu1 %v1513_v3, %s1308_s26  ;;  %v710_v4 = vld [vmem:[#allocation3 + $0x10] sm:$0xff] }
 0x29a   : > { %v1265_v5 = vpack.i.bf16 %v710_v4, %v1510_v2 }
 0x29d   : > { %751 = vrot.lane.b32.xlu0 %v1513_v3, %s1309_s27  ;;  %755 = vrot.lane.b32.xlu1 %v710_v4, %s1309_s27 }
 0x2a1   : > { %728 = vrot.lane.b32.xlu0 %v1513_v3, %s1310_s28  ;;  %1266 = vrot.lane.b32.xlu1 %v1265_v5, %s1308_s26 }
 0x2a5   : > { %716 = vrot.lane.b32.xlu1 %v1513_v3, %s1311_s29  ;;  %1261 = vrot.lane.b32.xlu0 %v1265_v5, %s1307_s25 }
 0x2a9   : > { %1271 = vrot.lane.b32.xlu1 %v1265_v5, %s1310_s28  ;;  %753 = vrot.lane.b32.xlu0 %v1510_v2, %s1309_s27  ;;  %s1154_s27 = sshll.u32 %s1653_s19, 4 }
 0x2ad   : > { %718 = vrot.lane.b32.xlu1 %v1510_v2, %s1311_s29  ;;  %720 = vrot.lane.b32.xlu0 %v710_v4, %s1311_s29 }
 0x2b1   : > { %1281 = vrot.lane.b32.xlu1 %v1265_v5, %s1315_s10  ;;  %924 = vrot.lane.b32.xlu0 %v1513_v3, %s1312_s30 }
 0x2b5   : > { %948 = vrot.lane.b32.xlu1 %v1513_v3, %s1315_s10  ;;  %1276 = vrot.lane.b32.xlu0 %v1265_v5, %s1312_s30  ;;  %s241_s30 = scalar_lea.vmem %s1631_s5, %s1154_s27 }
 0x2b9   : > { %940 = vrot.lane.b32.xlu1 %v710_v4, %s1313_s6  ;;  %938 = vrot.lane.b32.xlu0 %v1510_v2, %s1313_s6 }
 0x2bd   : > { %1039 = vperm.xlu1 %1259, %v1036_v7   ;;  %936 = vrot.lane.b32.xlu0 %v1513_v3, %s1313_s6 }
 0x30b   : > { %v740_v8 = vpop.permute.xlu0 %739  ;;  %v764_v9 = vpop.permute.xlu1 %763 }
 0x30f   : > { %v752_v10 = vpop.permute.xlu0 %751  ;;  %v756_v11 = vpop.permute.xlu1 %755 }
 0x313   : > { %v729_v12 = vpop.permute.xlu0 %728  ;;  %v1267_v13 = vpop.permute.xlu1 %1266 }
 0x314   : > { %v1269_v14 = vunpack.i.h.bf16 %v1267_v13  ;;  %v1268_v15 = vunpack.i.l.bf16 %v1267_v13 }
 0x316   : > { %v770_v20 = vsel %vm369_vm8, %v1268_v15, %v1269_v14  ;;  %v769_v23 = vsel %vm369_vm8, %v764_v9, %v1268_v15 }
 0x317   : > { %v1262_v16 = vpop.permute.xlu0 %1261  ;;  %v717_v17 = vpop.permute.xlu1 %716 }
 0x318   : > { %v1264_v18 = vunpack.i.h.bf16 %v1262_v16  ;;  %v1263_v6 = vunpack.i.l.bf16 %v1262_v16 }
 0x31a   : > { %v746_v19 = vsel %vm343_vm7, %v1263_v6, %v1264_v18  ;;  %v745_v22 = vsel %vm343_vm7, %v740_v8, %v1263_v6  ;;  %vm1648_vm7 = vcmask 1031168  }
 0x31b   : > { %v754_v24 = vpop.permute.xlu0 %753  ;;  %v1272_v25 = vpop.permute.xlu1 %1271  ;;  %v1173_v28 = vpack.c.bf16 %v770_v20, %v746_v19  ;;  %v1176_v29 = vpack.c.bf16 %v769_v23, %v745_v22  ;;  %vm1649_vm8 = vmmov %vm1648_vm7 }
 0x31c   : > { %v1274_v27 = vunpack.i.h.bf16 %v1272_v25  ;;  %v1273_v31 = vunpack.i.l.bf16 %v1272_v25  ;;  %v758_v32 = vsel %vm356_vm10, %v754_v24, %v756_v11  ;;  %v757_v39 = vsel %vm356_vm10, %v752_v10, %v754_v24  ;;  %vm1651_vm10 = vmmov %vm1650_vm9 }
 0x31d   : > { %1175 = vmatprep.subr.msk.bf16.mxu1 %vm1554_vm3, %v1173_v28 }
 0x31e   : > { %v735_v33 = vsel %vm328_vm12, %v1273_v31, %v1274_v27  ;;  %1178 = vmatpush1.bf16.msk.msra.mxu1 %vm1563_vm5, %v1176_v29  ;;  %v734_v34 = vsel %vm328_vm12, %v729_v12, %v1273_v31 }
 0x31f   : > { %v721_v26 = vpop.permute.xlu0 %720  ;;  %v719_v35 = vpop.permute.xlu1 %718  ;;  %1137 = vmatprep.subr.msk.mxu1 %vm1418_vm11, %v758_v32  ;;  %v1179_v40 = vpack.c.bf16 %v735_v33, %v1510_v2  ;;  %v1182_v41 = vpack.c.bf16 %v734_v34, %v1513_v3 }
 0x320   : > { %v723_v44 = vsel %vm1648_vm7, %v719_v35, %v721_v26  ;;  %v722_v47 = vsel %vm1649_vm8, %v717_v17, %v719_v35 }
 0x322   : > { %1138 = vmatpush1.msk.msra.mxu1 %vm1423_vm13, %v757_v39 }
 0x323   : > { %v925_v42 = vpop.permute.xlu0 %924  ;;  %v1282_v43 = vpop.permute.xlu1 %1281  ;;  %1139 = vmatmul.mubr.msk.f32.vlgmr.msra.gmra.mrb[0].mxu1 %vm775_vm6, %v1134_v37  ;;  %1181 = vmatprep.subr.msk.bf16.mxu1 %vm1554_vm3, %v1179_v40 }
 0x324   : > { %1184 = vmatpush1.bf16.msk.msra.mxu1 %vm1563_vm5, %v1182_v41  ;;  %917 = vmatprep.mubr.f32.mxu1 %v1305_v0  ;;  %v1284_v45 = vunpack.i.h.bf16 %v1282_v43  ;;  %v1283_v46 = vunpack.i.l.bf16 %v1282_v43 }
 0x325   : > { %1142 = vmatprep.subr.msk.mxu1 %vm1418_vm11, %v723_v44 }
 0x326   : > { %v955_v53 = vsel %vm571_vm15, %v1283_v46, %v1284_v45 }
 0x327   : > { %v1277_v48 = vpop.permute.xlu0 %1276  ;;  %v949_v49 = vpop.permute.xlu1 %948 }
 0x328   : > { %v1279_v50 = vunpack.i.h.bf16 %v1277_v48  ;;  %v1278_v51 = vunpack.i.l.bf16 %v1277_v48  ;;  %1143 = vmatpush1.msk.msra.mxu1 %vm1423_vm13, %v722_v47  ;;  %v954_v56 = vsel %vm571_vm15, %v949_v49, %v1283_v46 }
 0x32a   : > { %v931_v54 = vsel %vm545_vm4, %v1278_v51, %v1279_v50  ;;  %v930_v55 = vsel %vm545_vm4, %v925_v42, %v1278_v51 }
 0x32b   : > { %v1185_v57 = vpack.c.bf16 %v955_v53, %v931_v54  ;;  %v1188_v58 = vpack.c.bf16 %v954_v56, %v930_v55  ;;  %v939_v59 = vpop.permute.xlu0 %938  ;;  %v941_v60 = vpop.permute.xlu1 %940  ;;  %1144 = vmatmul.mubr.msk.f32.vlgmr.msra.gmra.mrb[0].mxu1 %vm775_vm6, %v738_v52 }
 0x32c   : > { %1027 = vmatprep.mubr.f32.mxu1 %v1305_v0  ;;  %v943_v61 = vsel %vm1650_vm9, %v939_v59, %v941_v60 }
 0x32d   : > { %1187 = vmatprep.subr.msk.bf16.mxu1 %vm1554_vm3, %v1185_v57 }
 0x32e   : > { %1190 = vmatpush1.bf16.msk.msra.mxu1 %vm1563_vm5, %v1188_v58 }
 0x32f   : > { %v937_v62 = vpop.permute.xlu0 %936  ;;  %1148 = vmatprep.subr.msk.mxu1 %vm1418_vm11, %v943_v61 }
 0x330   : > { %v942_v63 = vsel %vm1651_vm10, %v937_v62, %v939_v59 }
 0x332   : > { %1149 = vmatpush1.msk.msra.mxu1 %vm1423_vm13, %v942_v63 }
 0x333   : > { %1150 = vmatmul.mubr.msk.f32.vlgmr.msra.gmra.mrb[0].mxu1 %vm775_vm6, %v1145_v1 }
 0x33c   : > { %v1040_v0 = vpop.permute.xlu1 %1039 }
 0x406   : > { %v1029_v2 = vpop.f32.mrb[0].mxu1 }
 0x407   : > { %v1042_v36 = vadd.f32 %v1040_v0, %v1029_v2  ;;  %v1031_v3 = vpop.f32.mrb[1].mxu1 }
 0x408   : > { %v1043_v4 = vadd.f32 %v1040_v0, %v1031_v3 }
 0x409   : > { %1044 = vst [vmem:[%s241_s30] sm:$0xff] %v1042_v36 }
 0x40a   : > { %1045 = vst [vmem:[%s241_s30 + $0x8] sm:$0xff] %v1043_v4 }
 0x40b PF: > { %s15_s18 = sadd.s32 1, %s1303_s18  }
 0x40c   : > { %p12_p4 = scmp.ge.s32.totalorder %s15_s18, 4  }
 0x40e   :  { %14 = sbr.rel (!%p12_p4) target bundleno = 1 (0x1), region = 77 }

</bundles_post_ra>
